<compile_context>
chip_gen: v6e
topology: v6e:2x2x1
jax: 0.10.0
libtpu: 0.0.40
codegen_flags: <defaults>
</compile_context>

<pallas_src>
import jax
import jax.numpy as jnp
from jax.experimental import pallas as pl
from jax.experimental.pallas import tpu as pltpu

NUM_OUTPUTS = 7  # DummyU2NET returns [x] * 7

# Per-buffer tile caps (elements): 512 sublanes x 2048 lanes x 4 B = 4 MiB.
# Input + output double-buffered => <= 16 MiB of VMEM in flight (v7x-safe).
_ROW_CAP = 512
_COL_CAP = 2048


def _identity_kernel(x_ref, o_ref):
    # Pure pass-through: one tile load, one tile store.
    o_ref[...] = x_ref[...]


def _pick_block(dim, quantum, cap):
    """Pick a (quantum-aligned) block size <= cap.

    If the whole dimension fits under the cap, use it directly (a full-extent
    block is always legal regardless of (8,128) alignment).  Otherwise return
    the largest multiple of `quantum` <= cap; the grid uses pl.cdiv, so a
    non-dividing trailing block is clamped by Pallas instead of falling back
    to the full (possibly huge) dimension."""
    if dim <= cap:
        return dim
    t = cap - (cap % quantum)
    return max(t, quantum)


def _identity_copy_pallas(x):
    """Lane-dense tiled memcpy through VMEM (demo / materializing path)."""
    n, c, h, w = x.shape
    rows, cols = n * c, h * w
    # Row-major reshape preserves NCHW element order exactly; lane axis is a
    # large multiple of 128 for typical H*W instead of W=16 masked stores.
    flat = x.reshape(rows, cols)

    br = _pick_block(rows, 8, _ROW_CAP)     # sublane axis: multiple of 8
    bc = _pick_block(cols, 128, _COL_CAP)   # lane axis: multiple of 128
    grid = (pl.cdiv(rows, br), pl.cdiv(cols, bc))

    spec = pl.BlockSpec((br, bc), lambda i, j: (i, j))

    y_flat = pl.pallas_call(
        _identity_kernel,
        out_shape=jax.ShapeDtypeStruct((rows, cols), x.dtype),
        grid_spec=pltpu.PrefetchScalarGridSpec(
            num_scalar_prefetch=0,
            grid=grid,
            in_specs=[spec],
            out_specs=spec,
        ),
        compiler_params=pltpu.CompilerParams(
            dimension_semantics=("parallel", "parallel"),
            vmem_limit_bytes=32 * 1024 * 1024,
        ),
    )(flat)

    return y_flat.reshape(n, c, h, w)


def dummy_u2net_forward(x, *, run_identity_kernel=False):
    """JAX equivalent of DummyU2NET.forward.

    PyTorch `[x] * 7` is seven aliases of one tensor with zero compute, so the
    default path returns seven references to `x` with no kernel launch and no
    HBM traffic.  Set `run_identity_kernel=True` to route the tensor through
    the lane-dense identity Pallas kernel (materializes one copy)."""
    y = _identity_copy_pallas(x) if run_identity_kernel else x
    return [y] * NUM_OUTPUTS


if __name__ == "__main__":
    # DummyU2NET.__init__ defines no parameters; only the example input matters.
    key = jax.random.PRNGKey(0)
    x = jax.random.normal(key, (2, 4, 16, 16), dtype=jnp.float32)  # NCHW

    # Default (production) path: zero-cost aliasing, exactly like PyTorch.
    outputs_fast = dummy_u2net_forward(x)
    assert len(outputs_fast) == NUM_OUTPUTS
    assert all(o is x for o in outputs_fast)

    # Kernel path: run the Pallas identity kernel once and validate it.
    outputs = dummy_u2net_forward(x, run_identity_kernel=True)
    outputs = jax.block_until_ready(outputs)

    assert len(outputs) == NUM_OUTPUTS
    for o in outputs:
        assert o.shape == x.shape and o.dtype == x.dtype
        assert bool(jnp.array_equal(o, x))
    # All seven entries alias the same array, like PyTorch's `[x] * 7`.
    assert all(o is outputs[0] for o in outputs)

    print("KERNEL_OK")
</pallas_src>

<mosaic_0001>
module attributes {stable_mosaic.version = 11 : i64} {
  func.func @_identity_kernel(%arg0: i32, %arg1: i32, %arg2: memref<8x256xf32, #tpu.memory_space<vmem>>, %arg3: memref<8x256xf32, #tpu.memory_space<vmem>>) attributes {dimension_semantics = [#tpu.dimension_semantics<parallel>, #tpu.dimension_semantics<parallel>], iteration_bounds = array<i64: 1, 1>, scalar_prefetch = 0 : i64, scratch_operands = 0 : i64, tpu.core_type = #tpu.core_type<tc>, window_params = [{transform_indices = @transform_0, window_bounds = array<i64: 8, 256>}, {transform_indices = @transform_1, window_bounds = array<i64: 8, 256>}]} {
    %c0 = arith.constant 0 : index
    %c0_0 = arith.constant 0 : index
    %0 = vector.load %arg2[%c0, %c0_0] : memref<8x256xf32, #tpu.memory_space<vmem>>, vector<8x256xf32>
    %c0_1 = arith.constant 0 : index
    %c0_2 = arith.constant 0 : index
    %1 = vector.load %arg3[%c0_1, %c0_2] : memref<8x256xf32, #tpu.memory_space<vmem>>, vector<8x256xf32>
    tpu.vector_store %arg3[%c0_1, %c0_2], %0 {strides = array<i32>} : memref<8x256xf32, #tpu.memory_space<vmem>>, vector<8x256xf32>,
    return
  }
  func.func @transform_0(%arg0: i32, %arg1: i32) -> (i32, i32) {
    %c0_i32 = arith.constant 0 : i32
    return %arg0, %arg1 : i32, i32
  }
  func.func @transform_1(%arg0: i32, %arg1: i32) -> (i32, i32) {
    %c0_i32 = arith.constant 0 : i32
    return %arg0, %arg1 : i32, i32
  }
}

</mosaic_0001>

<bundles_post_ra>
// kernel: tpu_custom_call.1
= control target key start
LH: loop header
LB: loop body
LE: loop exit
PB: predicated region body
PF: predicated region fallthrough
CT: control target
= control target key end

     0   :  { %6 = vsyncpa [#allocation3], 0  ;;  %s104_s0 = inlined_call_operand.hbm [shape: f32[8,256], index: 0, kind: input, shape index: {}]   ;;  %s105_s1 = inlined_call_operand.hbm [shape: f32[8,256], index: 1, kind: output, shape index: {}]  }
   0x1   :  { %7 = vsyncpa [#allocation4], 0  ;;  %s86_s6 = smov [#allocation2]  }
   0x2   :  { %s14_s7 = sshll.u32 %s86_s6, 4  ;;  %s15_s7 = int_to_ptr.vmem [resolvable:$true] %s14_s7 }
   0x3   :  { %s50_s8 = scalar_lea.vmem %s15_s7, 256  ;;  %p55_p1 = scmp.lt.s32.totalorder %s15_s7, %s15_s7 }
   0x4   :  { %p51_p0 = scmp.ne.s32.totalorder %s15_s7, %s50_s8  ;;  %p56_p2 = scmp.lt.s32.totalorder %s50_s8, %s50_s8 }
   0x6   :  { %p57_p3 = por %p56_p2, %p55_p1 }
   0x8   :  { %p58_p4 = pnand %p57_p3, %p51_p0 }
   0xa   :  { %61 = shalt.err (!%p58_p4)
}
   0xb   :  { %17 = dma.hbm_to_vmem [thread:$0]  %s104_s0, 256, %s15_s7, [#allocation3]  }
   0xc   :  { %82 = dma.done.wait [#allocation3], 256  }
   0xd   :  { %83 = vsyncadd [#allocation3], 4294967040  ;;  %s87_s11 = smov [#allocation5]   ;;  %v21_v0 = vld [vmem:[#allocation2] sm:$0xff]  ;;  %v22_v1 = vld [vmem:[#allocation2 + $0x8] sm:$0xff] }
   0xe   :  { %s31_s12 = sshll.u32 %s87_s11, 4  ;;  %23 = vst [vmem:[#allocation5] sm:$0xff] %v21_v0  ;;  %24 = vst [vmem:[#allocation5 + $0x8] sm:$0xff] %v22_v1  ;;  %s32_s12 = int_to_ptr.vmem [resolvable:$true] %s31_s12 }
   0xf   :  { %s62_s13 = scalar_lea.vmem %s32_s12, 256  ;;  %p67_p6 = scmp.lt.s32.totalorder %s32_s12, %s32_s12 }
  0x10   :  { %p63_p5 = scmp.ne.s32.totalorder %s32_s12, %s62_s13  ;;  %p68_p7 = scmp.lt.s32.totalorder %s62_s13, %s62_s13 }
  0x12   :  { %p69_p8 = por %p68_p7, %p67_p6 }
  0x14   :  { %p70_p9 = pnand %p69_p8, %p63_p5 }
  0x16   :  { %73 = shalt.err (!%p70_p9)
}
  0x17   :  { %34 = dma.vmem_to_hbm [thread:$0]  %s32_s12, 256, %s105_s1, [#allocation4]  }
  0x18   :  { %84 = dma.done.wait [#allocation4], 256  }
  0x19   :  { %85 = vsyncadd [#allocation4], 4294967040 }
  0x1a   :  { %38 = vsyncpa [#allocation3], 1 }
  0x1b   :  { %39 = vsyncpa [#allocation4], 1 }

</bundles_post_ra>
